<compile_context>
chip_gen: v7x
topology: tpu7x:2x2x1
jax: 0.10.0
libtpu: 0.0.40
codegen_flags: <defaults>
</compile_context>

<pallas_src>
import functools
import math

import jax
import jax.numpy as jnp
import numpy as np
from jax.experimental import pallas as pl
from jax.experimental.pallas import tpu as pltpu  # noqa: F401  (TPU backend assumed)

SQRT2 = math.sqrt(2.0)
NEG_SLOPE = 0.2
EPS = 1e-8
BLUR_TAPS = (0.25, 0.75, 0.75, 0.25)   # separable [1,3,3,1]/64 * factor**2 blur


# ----------------------------------------------------------------------------
# Pallas kernels
# ----------------------------------------------------------------------------
def _mapping_kernel(z_ref, w_ref, b_ref, o_ref, *, n_layers):
    """Fused mapping network: PixelNorm + n_layers x (EqualLinear + fused lrelu)."""
    x = z_ref[...].astype(jnp.float32)
    x = x * jax.lax.rsqrt(jnp.mean(x * x, axis=-1, keepdims=True) + EPS)  # PixelNorm
    for l in range(n_layers):
        x = jnp.dot(x, w_ref[l], preferred_element_type=jnp.float32) + b_ref[l]
        x = jnp.where(x >= 0.0, x, NEG_SLOPE * x) * SQRT2                 # fused_leaky_relu
    o_ref[...] = x.astype(o_ref.dtype)


def mapping_network(z, w_stack, b_stack):
    n, d = z.shape
    return pl.pallas_call(
        functools.partial(_mapping_kernel, n_layers=w_stack.shape[0]),
        out_shape=jax.ShapeDtypeStruct((n, d), jnp.float32),
    )(z, w_stack, b_stack)


def _style_kernel(w_ref, mw_ref, mb_ref, wsq_ref, s_out_ref, d_out_ref, *, d_cols):
    """All per-layer style modulations in one matmul + demod factors for the
    demodulated conv layers (block-diagonal wsq)."""
    w = w_ref[...].astype(jnp.float32)
    s = jnp.dot(w, mw_ref[...], preferred_element_type=jnp.float32) + mb_ref[...]
    s_out_ref[...] = s.astype(s_out_ref.dtype)
    sd = s[:, :d_cols]
    demod = jax.lax.rsqrt(
        jnp.dot(sd * sd, wsq_ref[...], preferred_element_type=jnp.float32) + EPS)
    d_out_ref[...] = demod.astype(d_out_ref.dtype)


def style_modulation(w_lat, mw_cat, mb_cat, wsq_cat):
    b = w_lat.shape[0]
    return pl.pallas_call(
        functools.partial(_style_kernel, d_cols=wsq_cat.shape[0]),
        out_shape=(jax.ShapeDtypeStruct((b, mw_cat.shape[1]), jnp.float32),
                   jax.ShapeDtypeStruct((b, wsq_cat.shape[1]), jnp.float32)),
    )(w_lat, mw_cat, mb_cat, wsq_cat)


def _mod_conv_kernel(*refs, batch, k, wp, l_conv, l_out,
                     has_demod, has_noise, has_bias, has_skip, act, blur):
    """Modulated conv on strided-flat NCHW activations, batch folded in-kernel.

    x_ref: (1|B, Cin, P) padded+flattened input (lane index = h*wp + w)
    s_ref: (B, Cin, 1) style, w_ref: (K*K, Cout, Cin) per-tap weights.
    K*K big matmuls over shifted lane slices; optional demod / separable blur
    (upsample path) / noise / bias / skip / fused leaky-relu; one store per batch."""
    it = iter(refs)
    x_ref = next(it)
    s_ref = next(it)
    w_ref = next(it)
    d_ref = next(it) if has_demod else None
    n_ref = next(it) if has_noise else None
    nw_ref = next(it) if has_noise else None
    b_ref = next(it) if has_bias else None
    sk_ref = next(it) if has_skip else None
    o_ref = next(it)

    cout = o_ref.shape[1]
    xm = x_ref[...].astype(jnp.float32) * s_ref[...]        # (B, Cin, P) modulated input
    w_all = w_ref[...].astype(jnp.float32)                  # (K*K, Cout, Cin)
    taps = [w_all[t] for t in range(k * k)]
    bias = b_ref[...] if has_bias else None                 # (Cout, 1)
    nw = nw_ref[0, 0] if has_noise else None

    for b in range(batch):
        xb = xm[b]                                          # (Cin, P)
        acc = jnp.zeros((cout, l_conv), jnp.float32)
        for kh in range(k):
            for kw in range(k):
                off = kh * wp + kw
                acc = acc + jnp.dot(taps[kh * k + kw], xb[:, off:off + l_conv],
                                    preferred_element_type=jnp.float32)
        if has_demod:
            acc = acc * d_ref[b]                            # (Cout, 1) per-batch demod
        if blur:                                            # separable [1,3,3,1] blur (shift-adds)
            l2 = l_conv - 3 * wp
            f = BLUR_TAPS
            t = (f[0] * acc[:, 0:l2] + f[1] * acc[:, wp:wp + l2]
                 + f[2] * acc[:, 2 * wp:2 * wp + l2] + f[3] * acc[:, 3 * wp:3 * wp + l2])
            acc = (f[0] * t[:, 0:l_out] + f[1] * t[:, 1:1 + l_out]
                   + f[2] * t[:, 2:2 + l_out] + f[3] * t[:, 3:3 + l_out])
        if has_noise:
            acc = acc + nw * n_ref[b]                       # (1, Lout) noise row
        if has_bias:
            acc = acc + bias
        if has_skip:
            acc = acc + sk_ref[b].astype(jnp.float32)
        if act:
            acc = jnp.where(acc >= 0.0, acc, NEG_SLOPE * acc) * SQRT2
        o_ref[b] = acc.astype(o_ref.dtype)


def modulated_conv(x_flat, s, taps, *, batch, k, wp, l_conv, l_out, demod=None,
                   noise=None, noise_w=None, bias=None, skip=None, act=False, blur=False):
    cout = taps.shape[1]
    args = [x_flat, s, taps]
    if demod is not None:
        args.append(demod)
    if noise is not None:
        args += [noise, noise_w]
    if bias is not None:
        args.append(bias)
    if skip is not None:
        args.append(skip)
    kernel = functools.partial(
        _mod_conv_kernel, batch=batch, k=k, wp=wp, l_conv=l_conv, l_out=l_out,
        has_demod=demod is not None, has_noise=noise is not None,
        has_bias=bias is not None, has_skip=skip is not None, act=act, blur=blur)
    return pl.pallas_call(
        kernel, out_shape=jax.ShapeDtypeStruct((batch, cout, l_out), jnp.float32),
    )(*args)


# ----------------------------------------------------------------------------
# Plain-JAX glue (NCHW, cheap pad/reshape/slice; XLA fuses these between kernels)
# ----------------------------------------------------------------------------
def pad_flatten(x, pad):
    b, c, h, w = x.shape
    xp = jnp.pad(x, ((0, 0), (0, 0), (pad, pad), (pad, pad)))
    return xp.reshape(b, c, (h + 2 * pad) * (w + 2 * pad))


def dilate_pad_flatten(x, pad):
    """Zero-dilate by 2 (transposed-conv) and pad by `pad`, flattened spatially."""
    b, c, h, w = x.shape
    hp, wp = 2 * h - 1 + 2 * pad, 2 * w - 1 + 2 * pad
    xp = jnp.zeros((b, c, hp, wp), x.dtype)
    xp = xp.at[:, :, pad:pad + 2 * h - 1:2, pad:pad + 2 * w - 1:2].set(x)
    return xp.reshape(b, c, hp * wp)


def flatten_strided(x, w_stride, length):
    b, c, h, w = x.shape
    xp = jnp.pad(x, ((0, 0), (0, 0), (0, 0), (0, w_stride - w)))
    return xp.reshape(b, c, h * w_stride)[:, :, :length]


def unflatten_strided(y, h_out, w_out, w_stride):
    b, c, l = y.shape
    pad = h_out * w_stride - l
    if pad:
        y = jnp.pad(y, ((0, 0), (0, 0), (0, pad)))
    return y.reshape(b, c, h_out, w_stride)[:, :, :, :w_out]


def upsample_blur_2x(x):
    """upfirdn2d(x, k2d*4, up=2, pad=(2,1)) for the fixed [1,3,3,1] blur, NCHW,
    written as a polyphase shift-add (no grouped lax.conv)."""
    b, c, h, w = x.shape
    xp = jnp.pad(x, ((0, 0), (0, 0), (1, 1), (0, 0)))
    r_even = 0.25 * xp[:, :, :-2, :] + 0.75 * xp[:, :, 1:-1, :]
    r_odd = 0.75 * xp[:, :, 1:-1, :] + 0.25 * xp[:, :, 2:, :]
    rows = jnp.stack([r_even, r_odd], axis=3).reshape(b, c, 2 * h, w)
    rp = jnp.pad(rows, ((0, 0), (0, 0), (0, 0), (1, 1)))
    c_even = 0.25 * rp[:, :, :, :-2] + 0.75 * rp[:, :, :, 1:-1]
    c_odd = 0.75 * rp[:, :, :, 1:-1] + 0.25 * rp[:, :, :, 2:]
    return jnp.stack([c_even, c_odd], axis=4).reshape(b, c, 2 * h, 2 * w)


# ----------------------------------------------------------------------------
# SG2Generator
# ----------------------------------------------------------------------------
class SG2GeneratorPallas:
    """StyleGAN2 generator (SG2Generator.forward) built from Pallas TPU kernels.

    img_size=8 => synthesis: const(4x4) -> StyledConv -> ToRGB
                  -> upsample StyledConv -> StyledConv -> ToRGB (+up-sampled skip).
    """

    def __init__(self, key, latent_size=32, map_layers=4, img_size=8,
                 channels=(32, 16), n_mean_latent=64):
        assert img_size == 8  # TODO(synk): larger sizes just repeat identical up-sample blocks
        self.latent_size = latent_size
        self.n_latent = int(math.log2(img_size)) * 2 - 2            # = 4
        c4, c8 = channels
        self.blur_k2d = self._make_kernel([1.0, 3.0, 3.0, 1.0])
        self.params = self._init_params(key, latent_size, map_layers, c4, c8)
        self.prep = self._precompute(self.params, latent_size)
        # mean_latent(n): torch uses 4096 samples; smaller deterministic sample here.
        z = jax.random.normal(jax.random.fold_in(key, 999),
                              (n_mean_latent, latent_size), jnp.float32)
        self.mean_latent = jnp.mean(self.mapping(z), axis=0, keepdims=True)

    @staticmethod
    def _make_kernel(k):
        k = jnp.asarray(k, jnp.float32)
        k2 = jnp.outer(k, k)
        return k2 / jnp.sum(k2)

    @staticmethod
    def _init_params(key, d, map_layers, c4, c8):
        keys = iter(jax.random.split(key, 64))

        def nrm(shape, s=1.0):
            return s * jax.random.normal(next(keys), shape, jnp.float32)

        def conv_p(cin, cout, k):
            return dict(weight=nrm((cout, cin, k, k)),
                        mod_w=nrm((cin, d)), mod_b=jnp.ones((cin,), jnp.float32),
                        noise_w=nrm((), 0.1), act_bias=nrm((cout,), 0.1))

        def rgb_p(cin):
            return dict(weight=nrm((3, cin, 1, 1)),
                        mod_w=nrm((cin, d)), mod_b=jnp.ones((cin,), jnp.float32),
                        bias=nrm((3,), 0.1))

        return dict(
            # EqualLinear(lr_mul=0.01): torch stores weight = randn / lr_mul
            style=[(nrm((d, d)) / 0.01, nrm((d,), 0.1)) for _ in range(map_layers)],
            const=nrm((1, c4, 4, 4)),          # ConstantInput (NCHW, like torch)
            conv1=conv_p(c4, c4, 3),
            to_rgb1=rgb_p(c4),
            convs=[conv_p(c4, c8, 3), conv_p(c8, c8, 3)],
            to_rgbs=[rgb_p(c8)],
        )

    @staticmethod
    def _precompute(p, d):
        """Hoist all input-independent weight preprocessing out of forward()."""
        def eff(layer):
            _, cin, kk, _ = layer['weight'].shape
            return layer['weight'] * (1.0 / math.sqrt(cin * kk * kk))

        def taps_of(w_eff, flip=False):
            cout, cin, kk, _ = w_eff.shape
            wt = jnp.flip(w_eff, (2, 3)) if flip else w_eff
            return jnp.transpose(wt, (2, 3, 0, 1)).reshape(kk * kk, cout, cin)

        def wsq_of(w_eff):
            return jnp.transpose(jnp.sum(w_eff * w_eff, axis=(2, 3)))    # (Cin, Cout)

        lr = 0.01
        map_w = jnp.stack([(w * ((1.0 / math.sqrt(d)) * lr)).T for w, _ in p['style']])
        map_b = jnp.stack([(b * lr).reshape(1, d) for _, b in p['style']])

        c1, c2, c3 = p['conv1'], p['convs'][0], p['convs'][1]
        r1, r2 = p['to_rgb1'], p['to_rgbs'][0]
        mods = [c1, c2, c3, r1, r2]                       # demodulated layers first
        cins = [m['mod_w'].shape[0] for m in mods]
        mod_w = jnp.concatenate([(m['mod_w'] * (1.0 / math.sqrt(d))).T for m in mods], axis=1)
        mod_b = jnp.concatenate([m['mod_b'] for m in mods]).reshape(1, -1)
        s_off = [int(v) for v in np.cumsum([0] + cins)[:-1]]

        e1, e2, e3 = eff(c1), eff(c2), eff(c3)
        wsqs = [wsq_of(e1), wsq_of(e2), wsq_of(e3)]
        d_len = [w.shape[1] for w in wsqs]
        wsq_cat = jnp.zeros((sum(w.shape[0] for w in wsqs), sum(d_len)), jnp.float32)
        ri = ci = 0
        for w in wsqs:                                    # block-diagonal wsq
            wsq_cat = wsq_cat.at[ri:ri + w.shape[0], ci:ci + w.shape[1]].set(w)
            ri += w.shape[0]
            ci += w.shape[1]
        d_off = [int(v) for v in np.cumsum([0] + d_len)[:-1]]

        cpad = jnp.pad(p['const'], ((0, 0), (0, 0), (1, 1), (1, 1)))      # (1, C, 6, 6)
        const_flat = cpad.reshape(1, cpad.shape[1], cpad.shape[2] * cpad.shape[3])

        def conv_pack(layer, w_eff, flip=False):
            return dict(taps=taps_of(w_eff, flip),
                        bias=layer['act_bias'].reshape(-1, 1),
                        noise_w=jnp.asarray(layer['noise_w'], jnp.float32).reshape(1, 1))

        return dict(
            map_w=map_w, map_b=map_b,
            mod_w=mod_w, mod_b=mod_b, wsq_cat=wsq_cat,
            s_off=s_off, s_len=cins, d_off=d_off, d_len=d_len,
            const_flat=const_flat,
            conv1=conv_pack(c1, e1),
            conv2=conv_pack(c2, e2, flip=True),           # transposed-conv kernel is flipped
            conv3=conv_pack(c3, e3),
            rgb1=dict(taps=taps_of(eff(r1)), bias=r1['bias'].reshape(-1, 1)),
            rgb2=dict(taps=taps_of(eff(r2)), bias=r2['bias'].reshape(-1, 1)),
        )

    def mapping(self, z):
        return mapping_network(z, self.prep['map_w'], self.prep['map_b'])

    def style(self, styles):
        return [self.mapping(s) for s in styles]

    def forward(self, styles, return_latents=False, inject_index=None, truncation=1,
                truncation_latent=None, input_is_latent=False, input_is_s_code=False,
                noise=None, randomize_noise=True):
        del truncation_latent  # SG2Generator always passes self.mean_latent
        assert not input_is_s_code  # TODO(synk): get_s_code path not implemented
        if not input_is_latent:
            styles = [self.mapping(s) for s in styles]
        assert len(styles) == 1 and inject_index is None  # TODO(synk): style mixing not implemented
        w_lat = styles[0]
        if truncation < 1:
            w_lat = self.mean_latent + truncation * (w_lat - self.mean_latent)
        b = w_lat.shape[0]
        pr = self.prep

        # one fused matmul for every per-layer style modulation + demodulation factor
        s_all, demod_all = style_modulation(w_lat, pr['mod_w'], pr['mod_b'], pr['wsq_cat'])

        def s_of(i):
            return s_all[:, pr['s_off'][i]:pr['s_off'][i] + pr['s_len'][i], None]

        def d_of(i):
            return demod_all[:, pr['d_off'][i]:pr['d_off'][i] + pr['d_len'][i], None]

        # strided-flat geometry (img_size=8):
        #   conv1: 4x4, K=3  -> stride 6,  Lconv=Lout=22
        #   convs[0]: up 4->8, K=3, fused blur -> stride 13, Lconv=141, Lout=99
        #   convs[1]: 8x8, K=3 -> stride 10, Lconv=Lout=78
        if noise is None:
            # TODO(synk): randomize_noise draws fresh host RNG in torch; zeros used here.
            n1 = jnp.zeros((b, 1, 22), jnp.float32)
            n2 = jnp.zeros((b, 1, 99), jnp.float32)
            n3 = jnp.zeros((b, 1, 78), jnp.float32)
        else:
            n1 = flatten_strided(noise[0], 6, 22)
            n2 = flatten_strided(noise[1], 13, 99)
            n3 = flatten_strided(noise[2], 10, 78)

        # StyledConv 4x4 on the constant input (padded + flattened once at init)
        y = modulated_conv(pr['const_flat'], s_of(0), pr['conv1']['taps'],
                           batch=b, k=3, wp=6, l_conv=22, l_out=22,
                           demod=d_of(0), noise=n1, noise_w=pr['conv1']['noise_w'],
                           bias=pr['conv1']['bias'], act=True)
        out = unflatten_strided(y, 4, 4, 6)                        # (B, 32, 4, 4)

        # ToRGB 4x4
        y = modulated_conv(out.reshape(b, out.shape[1], 16), s_of(3), pr['rgb1']['taps'],
                           batch=b, k=1, wp=4, l_conv=16, l_out=16,
                           bias=pr['rgb1']['bias'])
        skip = y.reshape(b, 3, 4, 4)

        # StyledConv upsample 4x4 -> 8x8 (transposed conv + fused blur/noise/bias/act)
        y = modulated_conv(dilate_pad_flatten(out, 3), s_of(1), pr['conv2']['taps'],
                           batch=b, k=3, wp=13, l_conv=141, l_out=99, blur=True,
                           demod=d_of(1), noise=n2, noise_w=pr['conv2']['noise_w'],
                           bias=pr['conv2']['bias'], act=True)
        out = unflatten_strided(y, 8, 8, 13)                       # (B, 16, 8, 8)

        # StyledConv 8x8
        y = modulated_conv(pad_flatten(out, 1), s_of(2), pr['conv3']['taps'],
                           batch=b, k=3, wp=10, l_conv=78, l_out=78,
                           demod=d_of(2), noise=n3, noise_w=pr['conv3']['noise_w'],
                           bias=pr['conv3']['bias'], act=True)
        out = unflatten_strided(y, 8, 8, 10)                       # (B, 16, 8, 8)

        # ToRGB 8x8 + up-sampled skip (polyphase blur in XLA, add fused in-kernel)
        skip_up = upsample_blur_2x(skip).reshape(b, 3, 64)
        y = modulated_conv(out.reshape(b, out.shape[1], 64), s_of(4), pr['rgb2']['taps'],
                           batch=b, k=1, wp=8, l_conv=64, l_out=64,
                           bias=pr['rgb2']['bias'], skip=skip_up)
        image = y.reshape(b, 3, 8, 8)                              # NCHW like PyTorch

        if return_latents:
            latent = jnp.repeat(w_lat[:, None, :], self.n_latent, axis=1)
            return image, latent
        return image, None

    __call__ = forward


# ----------------------------------------------------------------------------
# Pure-JAX reference (mirrors the torch per-sample-weight formulation) for checking
# ----------------------------------------------------------------------------
def upfirdn2d_nhwc(x, k2d, up, pad0, pad1):
    """Reference upfirdn2d (zero up-sample, pad, FIR filter), NHWC, down=1."""
    B, H, W, C = x.shape
    if up > 1:
        xz = jnp.zeros((B, H, up, W, up, C), x.dtype)
        xz = xz.at[:, :, 0, :, 0, :].set(x)
        x = xz.reshape(B, H * up, W * up, C)
    x = jnp.pad(x, ((0, 0), (pad0, pad1), (pad0, pad1), (0, 0)))
    kh, kw = k2d.shape
    w = jnp.flip(k2d).astype(x.dtype).reshape(kh, kw, 1, 1)
    w = jnp.tile(w, (1, 1, 1, C))
    return jax.lax.conv_general_dilated(
        x, w, (1, 1), 'VALID', dimension_numbers=('NHWC', 'HWIO', 'NHWC'),
        feature_group_count=C, precision=jax.lax.Precision.HIGHEST)


def _ref_equal_linear(x, weight, bias, lr_mul, activation):
    scale = (1.0 / math.sqrt(weight.shape[1])) * lr_mul
    out = jnp.dot(x, (weight * scale).T, precision=jax.lax.Precision.HIGHEST) + bias * lr_mul
    if activation:
        out = jnp.where(out >= 0.0, out, NEG_SLOPE * out) * SQRT2
    return out


def _ref_grouped_conv(x, w, *, upsample):
    B, Cin, H, W = x.shape
    _, Cout, _, K, _ = w.shape
    xg = x.reshape(1, B * Cin, H, W)
    if upsample:
        wg = jnp.flip(w, axis=(3, 4)).reshape(B * Cout, Cin, K, K)
        out = jax.lax.conv_general_dilated(
            xg, wg, (1, 1), [(K - 1, K - 1)] * 2, lhs_dilation=(2, 2),
            dimension_numbers=('NCHW', 'OIHW', 'NCHW'), feature_group_count=B,
            precision=jax.lax.Precision.HIGHEST)
    else:
        wg = w.reshape(B * Cout, Cin, K, K)
        out = jax.lax.conv_general_dilated(
            xg, wg, (1, 1), [(K // 2, K // 2)] * 2,
            dimension_numbers=('NCHW', 'OIHW', 'NCHW'), feature_group_count=B,
            precision=jax.lax.Precision.HIGHEST)
    return out.reshape(B, Cout, out.shape[2], out.shape[3])


def _ref_blur_nchw(x, k2d, up, pad0, pad1):
    y = jnp.transpose(x, (0, 2, 3, 1))
    y = upfirdn2d_nhwc(y, k2d, up, pad0, pad1)
    return jnp.transpose(y, (0, 3, 1, 2))


def _ref_mod_conv(x, style, p, *, demodulate, upsample, blur_k2d):
    B, Cin, H, W = x.shape
    Cout, _, K, _ = p['weight'].shape
    scale = 1.0 / math.sqrt(Cin * K * K)
    s = _ref_equal_linear(style, p['mod_w'], p['mod_b'], 1.0, False)
    w = scale * p['weight'][None] * s[:, None, :, None, None]
    if demodulate:
        demod = jax.lax.rsqrt(jnp.sum(w * w, axis=(2, 3, 4)) + EPS)
        w = w * demod[:, :, None, None, None]
    out = _ref_grouped_conv(x, w, upsample=upsample)
    if upsample:
        out = _ref_blur_nchw(out, blur_k2d * 4.0, 1, 1, 1)
    return out


def ref_forward(params, blur_k2d, n_latent, z, noises, truncation, mean_latent):
    x = z * jax.lax.rsqrt(jnp.mean(z * z, axis=1, keepdims=True) + EPS)
    for (w, b) in params['style']:
        x = _ref_equal_linear(x, w, b, 0.01, True)
    if truncation < 1:
        x = mean_latent + truncation * (x - mean_latent)
    latent = jnp.repeat(x[:, None, :], n_latent, axis=1)
    B = z.shape[0]
    lrelu = lambda v: jnp.where(v >= 0.0, v, NEG_SLOPE * v) * SQRT2

    out = jnp.broadcast_to(params['const'], (B,) + params['const'].shape[1:])
    p = params['conv1']
    out = _ref_mod_conv(out, latent[:, 0], p, demodulate=True, upsample=False, blur_k2d=blur_k2d)
    out = lrelu(out + p['noise_w'] * noises[0] + p['act_bias'][None, :, None, None])
    p = params['to_rgb1']
    skip = _ref_mod_conv(out, latent[:, 1], p, demodulate=False, upsample=False, blur_k2d=blur_k2d)
    skip = skip + p['bias'][None, :, None, None]
    p = params['convs'][0]
    out = _ref_mod_conv(out, latent[:, 1], p, demodulate=True, upsample=True, blur_k2d=blur_k2d)
    out = lrelu(out + p['noise_w'] * noises[1] + p['act_bias'][None, :, None, None])
    p = params['convs'][1]
    out = _ref_mod_conv(out, latent[:, 2], p, demodulate=True, upsample=False, blur_k2d=blur_k2d)
    out = lrelu(out + p['noise_w'] * noises[2] + p['act_bias'][None, :, None, None])
    p = params['to_rgbs'][0]
    img = _ref_mod_conv(out, latent[:, 3], p, demodulate=False, upsample=False, blur_k2d=blur_k2d)
    img = img + p['bias'][None, :, None, None]
    img = img + _ref_blur_nchw(skip, blur_k2d * 4.0, 2, 2, 1)
    return img


# ----------------------------------------------------------------------------
if __name__ == "__main__":
    key = jax.random.PRNGKey(0)
    k_param, k_z, k_n1, k_n2, k_n3 = jax.random.split(key, 5)
    B, D = 2, 32
    gen = SG2GeneratorPallas(k_param, latent_size=D, map_layers=4, img_size=8)

    z = jax.random.normal(k_z, (B, D), jnp.float32)
    noises = [jax.random.normal(k_n1, (B, 1, 4, 4), jnp.float32),
              jax.random.normal(k_n2, (B, 1, 8, 8), jnp.float32),
              jax.random.normal(k_n3, (B, 1, 8, 8), jnp.float32)]

    fwd = jax.jit(lambda zz, nn: gen([zz], truncation=0.7, noise=nn)[0])
    img = jax.block_until_ready(fwd(z, noises))
    assert img.shape == (B, 3, 8, 8) and img.dtype == jnp.float32

    ref = jax.block_until_ready(
        ref_forward(gen.params, gen.blur_k2d, gen.n_latent, z, noises, 0.7, gen.mean_latent))
    err = float(jnp.max(jnp.abs(img - ref)))
    assert np.isfinite(err) and err < 3e-2, f"mismatch vs pure-JAX reference: {err}"
    print("KERNEL_OK")
</pallas_src>

<mosaic_0001>
module attributes {stable_mosaic.version = 11 : i64} {
  func.func @_mapping_kernel(%arg0: memref<64x32xf32, #tpu.memory_space<vmem>>, %arg1: memref<4x32x32xf32, #tpu.memory_space<vmem>>, %arg2: memref<4x1x32xf32, #tpu.memory_space<vmem>>, %arg3: memref<64x32xf32, #tpu.memory_space<vmem>>) attributes {dimension_semantics = [], scalar_prefetch = 0 : i64, scratch_operands = 0 : i64, tpu.core_type = #tpu.core_type<tc>} {
    %c0 = arith.constant 0 : index
    %c0_0 = arith.constant 0 : index
    %0 = vector.load %arg0[%c0, %c0_0] : memref<64x32xf32, #tpu.memory_space<vmem>>, vector<64x32xf32>
    %1 = arith.mulf %0, %0 : vector<64x32xf32>
    %cst = arith.constant dense<0.000000e+00> : vector<64xf32>
    %2 = vector.multi_reduction <add>, %1, %cst [1] : vector<64x32xf32> to vector<64xf32>
    %3 = vector.shape_cast %2 : vector<64xf32> to vector<64x1xf32>
    %cst_1 = arith.constant 3.200000e+01 : f32
    %4 = vector.broadcast %cst_1 : f32 to vector<64x1xf32>
    %5 = arith.divf %3, %4 : vector<64x1xf32>
    %cst_2 = arith.constant 9.99999993E-9 : f32
    %6 = vector.broadcast %cst_2 : f32 to vector<64x1xf32>
    %7 = arith.addf %5, %6 : vector<64x1xf32>
    %8 = math.rsqrt %7 : vector<64x1xf32>
    %9 = vector.broadcast %8 : vector<64x1xf32> to vector<64x32xf32>
    %10 = arith.mulf %0, %9 : vector<64x32xf32>
    %c0_3 = arith.constant 0 : index
    %c0_4 = arith.constant 0 : index
    %c0_5 = arith.constant 0 : index
    %11 = vector.load %arg1[%c0_3, %c0_4, %c0_5] : memref<4x32x32xf32, #tpu.memory_space<vmem>>, vector<1x32x32xf32>
    %12 = vector.shape_cast %11 : vector<1x32x32xf32> to vector<32x32xf32>
    %cst_6 = arith.constant dense<0.000000e+00> : vector<64x32xf32>
    %13 = tpu.matmul %10, %12, %cst_6 {dimension_numbers = #tpu.dot_dimension_numbers<[1], [0], [0], [1], [0, 0, 1, 1], [], []>} : vector<64x32xf32>, vector<32x32xf32>, vector<64x32xf32> -> vector<64x32xf32>
    %c0_7 = arith.constant 0 : index
    %c0_8 = arith.constant 0 : index
    %c0_9 = arith.constant 0 : index
    %14 = vector.load %arg2[%c0_7, %c0_8, %c0_9] : memref<4x1x32xf32, #tpu.memory_space<vmem>>, vector<1x1x32xf32>
    %15 = vector.shape_cast %14 : vector<1x1x32xf32> to vector<1x32xf32>
    %16 = vector.broadcast %15 : vector<1x32xf32> to vector<64x32xf32>
    %17 = arith.addf %13, %16 : vector<64x32xf32>
    %cst_10 = arith.constant 0.000000e+00 : f32
    %18 = vector.broadcast %cst_10 : f32 to vector<64x32xf32>
    %19 = arith.cmpf oge, %17, %18 : vector<64x32xf32>
    %cst_11 = arith.constant 2.000000e-01 : f32
    %20 = vector.broadcast %cst_11 : f32 to vector<64x32xf32>
    %21 = arith.mulf %20, %17 : vector<64x32xf32>
    %22 = arith.select %19, %17, %21 : vector<64x32xi1>, vector<64x32xf32>
    %cst_12 = arith.constant 1.41421354 : f32
    %23 = vector.broadcast %cst_12 : f32 to vector<64x32xf32>
    %24 = arith.mulf %22, %23 : vector<64x32xf32>
    %c1 = arith.constant 1 : index
    %c0_13 = arith.constant 0 : index
    %c0_14 = arith.constant 0 : index
    %25 = vector.load %arg1[%c1, %c0_13, %c0_14] : memref<4x32x32xf32, #tpu.memory_space<vmem>>, vector<1x32x32xf32>
    %26 = vector.shape_cast %25 : vector<1x32x32xf32> to vector<32x32xf32>
    %cst_15 = arith.constant dense<0.000000e+00> : vector<64x32xf32>
    %27 = tpu.matmul %24, %26, %cst_15 {dimension_numbers = #tpu.dot_dimension_numbers<[1], [0], [0], [1], [0, 0, 1, 1], [], []>} : vector<64x32xf32>, vector<32x32xf32>, vector<64x32xf32> -> vector<64x32xf32>
    %c1_16 = arith.constant 1 : index
    %c0_17 = arith.constant 0 : index
    %c0_18 = arith.constant 0 : index
    %28 = vector.load %arg2[%c1_16, %c0_17, %c0_18] : memref<4x1x32xf32, #tpu.memory_space<vmem>>, vector<1x1x32xf32>
    %29 = vector.shape_cast %28 : vector<1x1x32xf32> to vector<1x32xf32>
    %30 = vector.broadcast %29 : vector<1x32xf32> to vector<64x32xf32>
    %31 = arith.addf %27, %30 : vector<64x32xf32>
    %cst_19 = arith.constant 0.000000e+00 : f32
    %32 = vector.broadcast %cst_19 : f32 to vector<64x32xf32>
    %33 = arith.cmpf oge, %31, %32 : vector<64x32xf32>
    %cst_20 = arith.constant 2.000000e-01 : f32
    %34 = vector.broadcast %cst_20 : f32 to vector<64x32xf32>
    %35 = arith.mulf %34, %31 : vector<64x32xf32>
    %36 = arith.select %33, %31, %35 : vector<64x32xi1>, vector<64x32xf32>
    %cst_21 = arith.constant 1.41421354 : f32
    %37 = vector.broadcast %cst_21 : f32 to vector<64x32xf32>
    %38 = arith.mulf %36, %37 : vector<64x32xf32>
    %c2 = arith.constant 2 : index
    %c0_22 = arith.constant 0 : index
    %c0_23 = arith.constant 0 : index
    %39 = vector.load %arg1[%c2, %c0_22, %c0_23] : memref<4x32x32xf32, #tpu.memory_space<vmem>>, vector<1x32x32xf32>
    %40 = vector.shape_cast %39 : vector<1x32x32xf32> to vector<32x32xf32>
    %cst_24 = arith.constant dense<0.000000e+00> : vector<64x32xf32>
    %41 = tpu.matmul %38, %40, %cst_24 {dimension_numbers = #tpu.dot_dimension_numbers<[1], [0], [0], [1], [0, 0, 1, 1], [], []>} : vector<64x32xf32>, vector<32x32xf32>, vector<64x32xf32> -> vector<64x32xf32>
    %c2_25 = arith.constant 2 : index
    %c0_26 = arith.constant 0 : index
    %c0_27 = arith.constant 0 : index
    %42 = vector.load %arg2[%c2_25, %c0_26, %c0_27] : memref<4x1x32xf32, #tpu.memory_space<vmem>>, vector<1x1x32xf32>
    %43 = vector.shape_cast %42 : vector<1x1x32xf32> to vector<1x32xf32>
    %44 = vector.broadcast %43 : vector<1x32xf32> to vector<64x32xf32>
    %45 = arith.addf %41, %44 : vector<64x32xf32>
    %cst_28 = arith.constant 0.000000e+00 : f32
    %46 = vector.broadcast %cst_28 : f32 to vector<64x32xf32>
    %47 = arith.cmpf oge, %45, %46 : vector<64x32xf32>
    %cst_29 = arith.constant 2.000000e-01 : f32
    %48 = vector.broadcast %cst_29 : f32 to vector<64x32xf32>
    %49 = arith.mulf %48, %45 : vector<64x32xf32>
    %50 = arith.select %47, %45, %49 : vector<64x32xi1>, vector<64x32xf32>
    %cst_30 = arith.constant 1.41421354 : f32
    %51 = vector.broadcast %cst_30 : f32 to vector<64x32xf32>
    %52 = arith.mulf %50, %51 : vector<64x32xf32>
    %c3 = arith.constant 3 : index
    %c0_31 = arith.constant 0 : index
    %c0_32 = arith.constant 0 : index
    %53 = vector.load %arg1[%c3, %c0_31, %c0_32] : memref<4x32x32xf32, #tpu.memory_space<vmem>>, vector<1x32x32xf32>
    %54 = vector.shape_cast %53 : vector<1x32x32xf32> to vector<32x32xf32>
    %cst_33 = arith.constant dense<0.000000e+00> : vector<64x32xf32>
    %55 = tpu.matmul %52, %54, %cst_33 {dimension_numbers = #tpu.dot_dimension_numbers<[1], [0], [0], [1], [0, 0, 1, 1], [], []>} : vector<64x32xf32>, vector<32x32xf32>, vector<64x32xf32> -> vector<64x32xf32>
    %c3_34 = arith.constant 3 : index
    %c0_35 = arith.constant 0 : index
    %c0_36 = arith.constant 0 : index
    %56 = vector.load %arg2[%c3_34, %c0_35, %c0_36] : memref<4x1x32xf32, #tpu.memory_space<vmem>>, vector<1x1x32xf32>
    %57 = vector.shape_cast %56 : vector<1x1x32xf32> to vector<1x32xf32>
    %58 = vector.broadcast %57 : vector<1x32xf32> to vector<64x32xf32>
    %59 = arith.addf %55, %58 : vector<64x32xf32>
    %cst_37 = arith.constant 0.000000e+00 : f32
    %60 = vector.broadcast %cst_37 : f32 to vector<64x32xf32>
    %61 = arith.cmpf oge, %59, %60 : vector<64x32xf32>
    %cst_38 = arith.constant 2.000000e-01 : f32
    %62 = vector.broadcast %cst_38 : f32 to vector<64x32xf32>
    %63 = arith.mulf %62, %59 : vector<64x32xf32>
    %64 = arith.select %61, %59, %63 : vector<64x32xi1>, vector<64x32xf32>
    %cst_39 = arith.constant 1.41421354 : f32
    %65 = vector.broadcast %cst_39 : f32 to vector<64x32xf32>
    %66 = arith.mulf %64, %65 : vector<64x32xf32>
    %c0_40 = arith.constant 0 : index
    %c0_41 = arith.constant 0 : index
    %67 = vector.load %arg3[%c0_40, %c0_41] : memref<64x32xf32, #tpu.memory_space<vmem>>, vector<64x32xf32>
    tpu.vector_store %arg3[%c0_40, %c0_41], %66 {strides = array<i32>} : memref<64x32xf32, #tpu.memory_space<vmem>>, vector<64x32xf32>,
    return
  }
}

</mosaic_0001>

<bundles_post_ra>
// kernel: tpu_custom_call.1
= control target key start
LH: loop header
LB: loop body
LE: loop exit
PB: predicated region body
PF: predicated region fallthrough
CT: control target
= control target key end

     0   :  { %8 = vsyncpa [#allocation3], 0  ;;  %s1051_s12 = smov [#allocation2]   ;;  %s1234_s0 = inlined_call_operand.vmem [shape: f32[64,32], index: 0, kind: input, shape index: {}]   ;;  %s1235_s1 = inlined_call_operand.hbm [shape: f32[4,32,32], index: 1, kind: input, shape index: {}]   ;;  %s1236_s2 = inlined_call_operand.vmem [shape: f32[4,1,32], index: 2, kind: input, shape index: {}]   ;;  %s1237_s3 = inlined_call_operand.vmem [shape: f32[64,32], index: 3, kind: output, shape index: {}]  }
   0x1   :  { %s16_s13 = sshll.u32 %s1051_s12, 4  ;;  %s1027_s16 = scalar_lea.hbm %s1235_s1, 2048  ;;  %s17_s13 = int_to_ptr.vmem [resolvable:$true] %s16_s13 }
   0x2   :  { %p1028_p0 = scmp.ne.s32.totalorder %s1235_s1, %s1027_s16  ;;  %p1031_p1 = scmp.lt.u32.totalorder %s1027_s16, %s1235_s1 }
   0x4   :  { %p1033_p2 = pnand %p1031_p1, %p1028_p0 }
   0x6   :  { %1036 = shalt.err (!%p1033_p2)
}
   0x7   :  { %s1037_s21 = scalar_lea.vmem %s17_s13, 2048  ;;  %p1042_p4 = scmp.lt.s32.totalorder %s17_s13, %s17_s13 }
   0x8   :  { %p1038_p3 = scmp.ne.s32.totalorder %s17_s13, %s1037_s21  ;;  %p1043_p5 = scmp.lt.s32.totalorder %s1037_s21, %s1037_s21 }
   0xa   :  { %p1044_p6 = por %p1043_p5, %p1042_p4 }
   0xc   :  { %p1045_p7 = pnand %p1044_p6, %p1038_p3 }
   0xe   :  { %1048 = shalt.err (!%p1045_p7)
}
   0xf   :  { %s1052_s22 = smov 128   ;;  %s1053_s23 = smov 8  }
  0x10   :  { %22 = dma.hbm_to_vmem [thread:$0]  %s1235_s1, 2048, %s17_s13, [#allocation3], %s1052_s22, %s1052_s22, %s1053_s23  }
  0x11   :  { %1049 = dma.done.wait [#allocation3], 2048  }
  0x12   :  { %1050 = vsyncadd [#allocation3], 4294965248  ;;  %v1089_v0 = vld [vmem:[%s1234_s0] sm:$0xff]  ;;  %vm44_vm0 = vcmask 261120   ;;  %v1094_v1 = vld [vmem:[%s1234_s0 + $0x10] sm:$0xff] }
  0x13   :  { %v1099_v2 = vld [vmem:[%s1234_s0 + $0x8] sm:$0xff]  ;;  %v36_v3 = vmul.f32 %v1089_v0, %v1089_v0  ;;  %v38_v4 = vmul.f32 %v1094_v1, %v1094_v1  ;;  %v1110_v6 = vld [vmem:[%s1234_s0 + $0x18] sm:$0xff]  ;;  %v1117_v8 = vld [vmem:[%s1234_s0 + $0x20] sm:$0xff] }
  0x14   :  { %v37_v5 = vmul.f32 %v1099_v2, %v1099_v2  ;;  %v39_v7 = vmul.f32 %v1110_v6, %v1110_v6  ;;  %v1122_v9 = vld [vmem:[%s1234_s0 + $0x28] sm:$0xff]  ;;  %v40_v14 = vmul.f32 %v1117_v8, %v1117_v8  ;;  %v1135_v16 = vld [vmem:[%s1234_s0 + $0x30] sm:$0xff]  ;;  %v1140_v17 = vld [vmem:[%s1234_s0 + $0x38] sm:$0xff] }
  0x15   :  { %v45_v10 = vsel %vm44_vm0, %v36_v3, 0.0  ;;  %v51_v11 = vsel %vm44_vm0, %v38_v4, 0.0  ;;  %v41_v15 = vmul.f32 %v1122_v9, %v1122_v9  ;;  %v42_v20 = vmul.f32 %v1135_v16, %v1135_v16  ;;  %v102_v24 = vld [vmem:[#allocation2] sm:$0xff]  ;;  %v103_v25 = vld [vmem:[#allocation2 + $0x8] sm:$0xff]  ;;  %v104_v27 = vld [vmem:[#allocation2 + $0x10] sm:$0xff] }
  0x16   :  { %46 = vadd.xlane.f32.xlu0 %v45_v10  ;;  %52 = vadd.xlane.f32.xlu1 %v51_v11  ;;  %v48_v12 = vsel %vm44_vm0, %v37_v5, 0.0  ;;  %v54_v13 = vsel %vm44_vm0, %v39_v7, 0.0  ;;  %v57_v18 = vsel %vm44_vm0, %v40_v14, 0.0  ;;  %v43_v21 = vmul.f32 %v1140_v17, %v1140_v17  ;;  %v105_v28 = vld [vmem:[#allocation2 + $0x18] sm:$0xff]  ;;  %v276_v7 = vld [vmem:[#allocation2 + $0x28] sm:$0xff] }
  0x17   :  { %v60_v19 = vsel %vm44_vm0, %v41_v15, 0.0  ;;  %v63_v22 = vsel %vm44_vm0, %v42_v20, 0.0  ;;  %v976_v26 = vpack.c.bf16 %v103_v25, %v102_v24  ;;  %v980_v29 = vpack.c.bf16 %v105_v28, %v104_v27  ;;  %v278_v10 = vld [vmem:[#allocation2 + $0x38] sm:$0xff]  ;;  %v809_v15 = vld [vmem:[%s1236_s2] ss:$0 sm:$0xff] }
  0x18   :  { %v66_v23 = vsel %vm44_vm0, %v43_v21, 0.0 }
  0x19   :  { %977 = vmatprep.subr.bf16.mxu0 %v976_v26 }
  0x1a   :  { %49 = vadd.xlane.f32.xlu0 %v48_v12  ;;  %55 = vadd.xlane.f32.xlu1 %v54_v13  ;;  %v449_v12 = vld [vmem:[#allocation2 + $0x40] sm:$0xff]  ;;  %v450_v13 = vld [vmem:[#allocation2 + $0x48] sm:$0xff] }
  0x1b   :  { %979 = vmatpush3.bf16.msra.mxu0 %v976_v26  ;;  %v992_v14 = vpack.c.bf16 %v450_v13, %v449_v12 }
  0x1c   :  { %981 = vmatprep.subr.bf16.mxu0 %v980_v29 }
  0x1e   :  { %58 = vadd.xlane.f32.xlu0 %v57_v18  ;;  %61 = vadd.xlane.f32.xlu1 %v60_v19 }
  0x1f   :  { %983 = vmatpush3.bf16.msra.mxu0 %v980_v29 }
  0x20   :  { %993 = vmatprep.subr.bf16.mxu0 %v992_v14 }
  0x22   :  { %64 = vadd.xlane.f32.xlu0 %v63_v22  ;;  %67 = vadd.xlane.f32.xlu1 %v66_v23 }
  0xa3   :  { %v47_v30 = vpop.xlane.xlu0 %46  ;;  %v53_v31 = vpop.xlane.xlu1 %52 }
  0xa4   :  { %v70_v32 = vmul.f32 0.03125, %v47_v30  ;;  %v72_v33 = vmul.f32 0.03125, %v53_v31 }
  0xa6   :  { %v78_v34 = vadd.f32 1e-08, %v70_v32  ;;  %v80_v35 = vadd.f32 1e-08, %v72_v33 }
  0xa7   :  { %v50_v36 = vpop.xlane.xlu0 %49  ;;  %v56_v37 = vpop.xlane.xlu1 %55 }
  0xa8   :  { %1011 = vrsqrt.f32 %v78_v34  ;;  %v71_v38 = vmul.f32 0.03125, %v50_v36  ;;  %v73_v39 = vmul.f32 0.03125, %v56_v37 }
  0xa9   :  { %1013 = vrsqrt.f32 %v80_v35 }
  0xaa   :  { %v79_v40 = vadd.f32 1e-08, %v71_v38  ;;  %v81_v41 = vadd.f32 1e-08, %v73_v39 }
  0xab   :  { %v59_v42 = vpop.xlane.xlu0 %58  ;;  %v62_v43 = vpop.xlane.xlu1 %61 }
  0xac   :  { %1015 = vrsqrt.f32 %v79_v40  ;;  %v74_v44 = vmul.f32 0.03125, %v59_v42  ;;  %v75_v45 = vmul.f32 0.03125, %v62_v43 }
  0xad   :  { %1017 = vrsqrt.f32 %v81_v41 }
  0xae   :  { %v82_v46 = vadd.f32 1e-08, %v74_v44  ;;  %v83_v47 = vadd.f32 1e-08, %v75_v45 }
  0xaf   :  { %v65_v48 = vpop.xlane.xlu0 %64  ;;  %v68_v49 = vpop.xlane.xlu1 %67 }
  0xb0   :  { %1019 = vrsqrt.f32 %v82_v46  ;;  %v76_v50 = vmul.f32 0.03125, %v65_v48  ;;  %v77_v51 = vmul.f32 0.03125, %v68_v49 }
  0xb1   :  { %1021 = vrsqrt.f32 %v83_v47 }
  0xb2   :  { %v1012_v52 = vpop.eup %1011  ;;  %v84_v53 = vadd.f32 1e-08, %v76_v50  ;;  %v85_v54 = vadd.f32 1e-08, %v77_v51 }
  0xb3   :  { %v1014_v55 = vpop.eup %1013  ;;  %v94_v56 = vmul.f32 %v1012_v52, %v1089_v0 }
  0xb4   :  { %1023 = vrsqrt.f32 %v84_v53  ;;  %v96_v58 = vmul.f32 %v1014_v55, %v1094_v1 }
  0xb5   :  { %1025 = vrsqrt.f32 %v85_v54  ;;  %904 = vmatprep.mubr.msk.f32.mxu0 %vm44_vm0, %v94_v56  ;;  %v451_v56 = vld [vmem:[#allocation2 + $0x50] sm:$0xff] }
  0xb6   :  { %v1016_v57 = vpop.eup %1015 }
  0xb7   :  { %v1018_v59 = vpop.eup %1017  ;;  %v95_v60 = vmul.f32 %v1016_v57, %v1099_v2  ;;  %v452_v57 = vld [vmem:[#allocation2 + $0x58] sm:$0xff] }
  0xb8   :  { %v97_v61 = vmul.f32 %v1018_v59, %v1110_v6  ;;  %v275_v6 = vld [vmem:[#allocation2 + $0x20] sm:$0xff] }
  0xb9   :  { %905 = vmatmul.mubr.msk.f32.vlgmr.msra.gmra.mrb[0].mxu0 %vm44_vm0, %v95_v60  ;;  %v623_v59 = vld [vmem:[#allocation2 + $0x60] sm:$0xff]  ;;  %v624_v60 = vld [vmem:[#allocation2 + $0x68] sm:$0xff] }
  0xba   :  { %v1020_v62 = vpop.eup %1019  ;;  %907 = vmatprep.mubr.msk.f32.mxu0 %vm44_vm0, %v96_v58  ;;  %995 = vmatpush3.bf16.msra.mxu0 %v992_v14  ;;  %v996_v58 = vpack.c.bf16 %v452_v57, %v451_v56 }
  0xbb   :  { %v1022_v63 = vpop.eup %1021  ;;  %v98_v0 = vmul.f32 %v1020_v62, %v1117_v8  ;;  %v984_v8 = vpack.c.bf16 %v276_v7, %v275_v6  ;;  %v819_v62 = vld [vmem:[%s1236_s2 + $0x1] ss:$0 sm:$0xff] }
  0xbc   :  { %v99_v3 = vmul.f32 %v1022_v63, %v1122_v9  ;;  %v277_v9 = vld [vmem:[#allocation2 + $0x30] sm:$0xff]  ;;  %997 = vmatprep.subr.bf16.mxu0 %v996_v58 }
  0xbd   :  { %908 = vmatmul.mubr.msk.f32.gmra.mrb[2].mxu0 %vm44_vm0, %v97_v61  ;;  %985 = vmatprep.subr.bf16.mxu1 %v984_v8  ;;  %v988_v11 = vpack.c.bf16 %v278_v10, %v277_v9  ;;  %v1000_v61 = vpack.c.bf16 %v624_v60, %v623_v59 }
  0xbe   :  { %v1024_v4 = vpop.eup %1023  ;;  %910 = vmatprep.mubr.msk.f32.mxu0 %vm44_vm0, %v98_v0  ;;  %987 = vmatpush3.bf16.msra.mxu1 %v984_v8 }
  0xbf   :  { %v1026_v1 = vpop.eup %1025  ;;  %v100_v2 = vmul.f32 %v1024_v4, %v1135_v16  ;;  %989 = vmatprep.subr.bf16.mxu1 %v988_v11  ;;  %999 = vmatpush3.bf16.msra.mxu0 %v996_v58 }
  0xc0   :  { %v101_v5 = vmul.f32 %v1026_v1, %v1140_v17 }
  0xc1   :  { %911 = vmatmul.mubr.msk.f32.gmra.mrb[4].mxu0 %vm44_vm0, %v99_v3 }
  0xc2   :  { %913 = vmatprep.mubr.msk.f32.mxu0 %vm44_vm0, %v100_v2  ;;  %991 = vmatpush3.bf16.msra.mxu1 %v988_v11 }
  0xc3   :  { %1001 = vmatprep.subr.bf16.mxu1 %v1000_v61 }
  0xc5   :  { %914 = vmatmul.mubr.msk.f32.gmra.mrb[6].mxu0 %vm44_vm0, %v101_v5 }
 0x18c   :  { %v906_v16 = vpop.f32.mrb[0].mxu0 }
 0x18d   :  { %v209_v17 = vadd.f32 %v906_v16, %v809_v15  ;;  %v203_v18 = vpop.f32.mrb[1].mxu0 }
 0x18e   :  { %v204_v19 = vadd.f32 %v809_v15, %v203_v18 }
 0x18f   :  { %vm243_vm1 = vcmp.ge.f32.partialorder %v209_v17, 0.0  ;;  %v251_v20 = vmul.f32 0.2, %v209_v17 }
 0x190   :  { %v250_v21 = vmul.f32 0.2, %v204_v19  ;;  %v909_v22 = vpop.f32.mrb[2].mxu0  ;;  %vm242_vm2 = vcmp.ge.f32.partialorder %v204_v19, 0.0 }
 0x191   :  { %v259_v23 = vsel %vm243_vm1, %v209_v17, %v251_v20  ;;  %v219_v24 = vadd.f32 %v909_v22, %v809_v15  ;;  %v213_v25 = vpop.f32.mrb[3].mxu0 }
 0x192   :  { %v214_v26 = vadd.f32 %v809_v15, %v213_v25  ;;  %v258_v27 = vsel %vm242_vm2, %v204_v19, %v250_v21  ;;  %v267_v30 = vmul.f32 1.4142135, %v259_v23 }
 0x193   :  { %vm245_vm3 = vcmp.ge.f32.partialorder %v219_v24, 0.0  ;;  %v253_v28 = vmul.f32 0.2, %v219_v24  ;;  %v266_v29 = vmul.f32 1.4142135, %v258_v27 }
 0x194   :  { %vm244_vm4 = vcmp.ge.f32.partialorder %v214_v26, 0.0  ;;  %v252_v31 = vmul.f32 0.2, %v214_v26  ;;  %v912_v32 = vpop.f32.mrb[4].mxu0 }
 0x195   :  { %v261_v33 = vsel %vm245_vm3, %v219_v24, %v253_v28  ;;  %v229_v34 = vadd.f32 %v912_v32, %v809_v15  ;;  %v223_v35 = vpop.f32.mrb[5].mxu0  ;;  %924 = vmatprep.mubr.msk.f32.mxu1 %vm44_vm0, %v266_v29 }
 0x196   :  { %v260_v36 = vsel %vm244_vm4, %v214_v26, %v252_v31  ;;  %v224_v37 = vadd.f32 %v809_v15, %v223_v35  ;;  %925 = vmatmul.mubr.msk.f32.vlgmr.msra.gmra.mrb[0].mxu1 %vm44_vm0, %v267_v30  ;;  %v269_v40 = vmul.f32 1.4142135, %v261_v33 }
 0x197   :  { %v268_v38 = vmul.f32 1.4142135, %v260_v36  ;;  %vm247_vm5 = vcmp.ge.f32.partialorder %v229_v34, 0.0  ;;  %v255_v39 = vmul.f32 0.2, %v229_v34  ;;  %1003 = vmatpush3.bf16.msra.mxu1 %v1000_v61 }
 0x198   :  { %vm246_vm6 = vcmp.ge.f32.partialorder %v224_v37, 0.0  ;;  %v254_v41 = vmul.f32 0.2, %v224_v37  ;;  %v915_v42 = vpop.f32.mrb[6].mxu0 }
 0x199   :  { %v263_v43 = vsel %vm247_vm5, %v229_v34, %v255_v39  ;;  %v239_v44 = vadd.f32 %v915_v42, %v809_v15  ;;  %v233_v45 = vpop.f32.mrb[7].mxu0  ;;  %927 = vmatprep.mubr.msk.f32.mxu1 %vm44_vm0, %v268_v38  ;;  %v625_v39 = vld [vmem:[#allocation2 + $0x70] sm:$0xff]  ;;  %v829_v42 = vld [vmem:[%s1236_s2 + $0x2] ss:$0 sm:$0xff] }
 0x19a   :  { %v262_v46 = vsel %vm246_vm6, %v224_v37, %v254_v41  ;;  %v234_v47 = vadd.f32 %v809_v15, %v233_v45  ;;  %928 = vmatmul.mubr.msk.f32.gmra.mrb[2].mxu1 %vm44_vm0, %v269_v40  ;;  %v271_v50 = vmul.f32 1.4142135, %v263_v43  ;;  %v626_v40 = vld [vmem:[#allocation2 + $0x78] sm:$0xff] }
 0x19b   :  { %v270_v48 = vmul.f32 1.4142135, %v262_v46  ;;  %vm249_vm7 = vcmp.ge.f32.partialorder %v239_v44, 0.0  ;;  %v257_v49 = vmul.f32 0.2, %v239_v44  ;;  %v1004_v41 = vpack.c.bf16 %v626_v40, %v625_v39 }
 0x19c   :  { %vm248_vm8 = vcmp.ge.f32.partialorder %v234_v47, 0.0  ;;  %v256_v51 = vmul.f32 0.2, %v234_v47 }
 0x19d   :  { %v265_v52 = vsel %vm249_vm7, %v239_v44, %v257_v49  ;;  %930 = vmatprep.mubr.msk.f32.mxu1 %vm44_vm0, %v270_v48  ;;  %1005 = vmatprep.subr.bf16.mxu1 %v1004_v41 }
 0x19e   :  { %v264_v53 = vsel %vm248_vm8, %v234_v47, %v256_v51  ;;  %931 = vmatmul.mubr.msk.f32.gmra.mrb[4].mxu1 %vm44_vm0, %v271_v50  ;;  %v273_v55 = vmul.f32 1.4142135, %v265_v52 }
 0x19f   :  { %v272_v54 = vmul.f32 1.4142135, %v264_v53  ;;  %1007 = vmatpush3.bf16.msra.mxu1 %v1004_v41 }
 0x1a1   :  { %933 = vmatprep.mubr.msk.f32.mxu1 %vm44_vm0, %v272_v54 }
 0x1a2   :  { %934 = vmatmul.mubr.msk.f32.gmra.mrb[6].mxu1 %vm44_vm0, %v273_v55 }
 0x269   :  { %v926_v63 = vpop.f32.mrb[0].mxu1 }
 0x26a   :  { %v383_v0 = vadd.f32 %v926_v63, %v819_v62  ;;  %v377_v3 = vpop.f32.mrb[1].mxu1 }
 0x26b   :  { %v378_v4 = vadd.f32 %v819_v62, %v377_v3 }
 0x26c   :  { %vm417_vm9 = vcmp.ge.f32.partialorder %v383_v0, 0.0  ;;  %v425_v1 = vmul.f32 0.2, %v383_v0 }
 0x26d   :  { %vm416_vm10 = vcmp.ge.f32.partialorder %v378_v4, 0.0  ;;  %v424_v2 = vmul.f32 0.2, %v378_v4  ;;  %v929_v5 = vpop.f32.mrb[2].mxu1 }
 0x26e   :  { %v433_v6 = vsel %vm417_vm9, %v383_v0, %v425_v1  ;;  %v393_v7 = vadd.f32 %v929_v5, %v819_v62  ;;  %v387_v8 = vpop.f32.mrb[3].mxu1 }
 0x26f   :  { %v432_v9 = vsel %vm416_vm10, %v378_v4, %v424_v2  ;;  %v388_v10 = vadd.f32 %v819_v62, %v387_v8  ;;  %v441_v13 = vmul.f32 1.4142135, %v433_v6 }
 0x270   :  { %v440_v11 = vmul.f32 1.4142135, %v432_v9  ;;  %vm419_vm11 = vcmp.ge.f32.partialorder %v393_v7, 0.0  ;;  %v427_v12 = vmul.f32 0.2, %v393_v7 }
 0x271   :  { %vm418_vm12 = vcmp.ge.f32.partialorder %v388_v10, 0.0  ;;  %v426_v14 = vmul.f32 0.2, %v388_v10  ;;  %v932_v15 = vpop.f32.mrb[4].mxu1 }
 0x272   :  { %v435_v16 = vsel %vm419_vm11, %v393_v7, %v427_v12  ;;  %v403_v17 = vadd.f32 %v932_v15, %v819_v62  ;;  %v397_v18 = vpop.f32.mrb[5].mxu1  ;;  %944 = vmatprep.mubr.msk.f32.mxu0 %vm44_vm0, %v440_v11 }
 0x273   :  { %v434_v19 = vsel %vm418_vm12, %v388_v10, %v426_v14  ;;  %v398_v20 = vadd.f32 %v819_v62, %v397_v18  ;;  %945 = vmatmul.mubr.msk.f32.vlgmr.msra.gmra.mrb[8].mxu0 %vm44_vm0, %v441_v13  ;;  %v443_v23 = vmul.f32 1.4142135, %v435_v16 }
 0x274   :  { %v442_v21 = vmul.f32 1.4142135, %v434_v19  ;;  %vm421_vm13 = vcmp.ge.f32.partialorder %v403_v17, 0.0  ;;  %v429_v22 = vmul.f32 0.2, %v403_v17 }
 0x275   :  { %vm420_vm14 = vcmp.ge.f32.partialorder %v398_v20, 0.0  ;;  %v428_v24 = vmul.f32 0.2, %v398_v20  ;;  %v935_v25 = vpop.f32.mrb[6].mxu1  ;;  %v839_v19 = vld [vmem:[%s1236_s2 + $0x3] ss:$0 sm:$0xff] }
 0x276   :  { %v437_v26 = vsel %vm421_vm13, %v403_v17, %v429_v22  ;;  %v413_v27 = vadd.f32 %v935_v25, %v819_v62  ;;  %v407_v28 = vpop.f32.mrb[7].mxu1  ;;  %947 = vmatprep.mubr.msk.f32.mxu0 %vm44_vm0, %v442_v21 }
 0x277   :  { %v436_v29 = vsel %vm420_vm14, %v398_v20, %v428_v24  ;;  %v408_v30 = vadd.f32 %v819_v62, %v407_v28  ;;  %948 = vmatmul.mubr.msk.f32.gmra.mrb[10].mxu0 %vm44_vm0, %v443_v23  ;;  %v445_v33 = vmul.f32 1.4142135, %v437_v26 }
 0x278   :  { %v444_v31 = vmul.f32 1.4142135, %v436_v29  ;;  %vm423_vm15 = vcmp.ge.f32.partialorder %v413_v27, 0.0  ;;  %v431_v32 = vmul.f32 0.2, %v413_v27 }
 0x279   :  { %vm422_vm1 = vcmp.ge.f32.partialorder %v408_v30, 0.0  ;;  %v430_v34 = vmul.f32 0.2, %v408_v30 }
 0x27a   :  { %v439_v35 = vsel %vm423_vm15, %v413_v27, %v431_v32  ;;  %950 = vmatprep.mubr.msk.f32.mxu0 %vm44_vm0, %v444_v31 }
 0x27b   :  { %v438_v36 = vsel %vm422_vm1, %v408_v30, %v430_v34  ;;  %951 = vmatmul.mubr.msk.f32.gmra.mrb[12].mxu0 %vm44_vm0, %v445_v33  ;;  %v447_v38 = vmul.f32 1.4142135, %v439_v35 }
 0x27c   :  { %v446_v37 = vmul.f32 1.4142135, %v438_v36 }
 0x27e   :  { %953 = vmatprep.mubr.msk.f32.mxu0 %vm44_vm0, %v446_v37 }
 0x27f   :  { %954 = vmatmul.mubr.msk.f32.gmra.mrb[14].mxu0 %vm44_vm0, %v447_v38 }
 0x346   :  { %v946_v43 = vpop.f32.mrb[8].mxu0 }
 0x347   :  { %v557_v44 = vadd.f32 %v946_v43, %v829_v42  ;;  %v551_v45 = vpop.f32.mrb[9].mxu0 }
 0x348   :  { %v552_v46 = vadd.f32 %v829_v42, %v551_v45 }
 0x349   :  { %vm591_vm2 = vcmp.ge.f32.partialorder %v557_v44, 0.0  ;;  %v599_v47 = vmul.f32 0.2, %v557_v44 }
 0x34a   :  { %vm590_vm3 = vcmp.ge.f32.partialorder %v552_v46, 0.0  ;;  %v598_v48 = vmul.f32 0.2, %v552_v46  ;;  %v949_v49 = vpop.f32.mrb[10].mxu0 }
 0x34b   :  { %v607_v50 = vsel %vm591_vm2, %v557_v44, %v599_v47  ;;  %v567_v51 = vadd.f32 %v949_v49, %v829_v42  ;;  %v561_v52 = vpop.f32.mrb[11].mxu0 }
 0x34c   :  { %v606_v53 = vsel %vm590_vm3, %v552_v46, %v598_v48  ;;  %v562_v54 = vadd.f32 %v829_v42, %v561_v52  ;;  %v615_v57 = vmul.f32 1.4142135, %v607_v50 }
 0x34d   :  { %v614_v55 = vmul.f32 1.4142135, %v606_v53  ;;  %vm593_vm4 = vcmp.ge.f32.partialorder %v567_v51, 0.0  ;;  %v601_v56 = vmul.f32 0.2, %v567_v51 }
 0x34e   :  { %vm592_vm5 = vcmp.ge.f32.partialorder %v562_v54, 0.0  ;;  %v600_v58 = vmul.f32 0.2, %v562_v54  ;;  %v952_v59 = vpop.f32.mrb[12].mxu0 }
 0x34f   :  { %v609_v60 = vsel %vm593_vm4, %v567_v51, %v601_v56  ;;  %v577_v61 = vadd.f32 %v952_v59, %v829_v42  ;;  %v571_v62 = vpop.f32.mrb[13].mxu0  ;;  %964 = vmatprep.mubr.msk.f32.mxu1 %vm44_vm0, %v614_v55 }
 0x350   :  { %v608_v63 = vsel %vm592_vm5, %v562_v54, %v600_v58  ;;  %v572_v0 = vadd.f32 %v829_v42, %v571_v62  ;;  %965 = vmatmul.mubr.msk.f32.vlgmr.msra.gmra.mrb[8].mxu1 %vm44_vm0, %v615_v57  ;;  %v617_v1 = vmul.f32 1.4142135, %v609_v60 }
 0x351   :  { %v616_v3 = vmul.f32 1.4142135, %v608_v63  ;;  %vm595_vm6 = vcmp.ge.f32.partialorder %v577_v61, 0.0  ;;  %v603_v4 = vmul.f32 0.2, %v577_v61 }
 0x352   :  { %vm594_vm7 = vcmp.ge.f32.partialorder %v572_v0, 0.0  ;;  %v602_v2 = vmul.f32 0.2, %v572_v0  ;;  %v955_v5 = vpop.f32.mrb[14].mxu0 }
 0x353   :  { %v611_v6 = vsel %vm595_vm6, %v577_v61, %v603_v4  ;;  %v587_v7 = vadd.f32 %v955_v5, %v829_v42  ;;  %v581_v8 = vpop.f32.mrb[15].mxu0  ;;  %967 = vmatprep.mubr.msk.f32.mxu1 %vm44_vm0, %v616_v3 }
 0x354   :  { %v610_v9 = vsel %vm594_vm7, %v572_v0, %v602_v2  ;;  %v582_v10 = vadd.f32 %v829_v42, %v581_v8  ;;  %968 = vmatmul.mubr.msk.f32.gmra.mrb[10].mxu1 %vm44_vm0, %v617_v1  ;;  %v619_v13 = vmul.f32 1.4142135, %v611_v6 }
 0x355   :  { %v618_v11 = vmul.f32 1.4142135, %v610_v9  ;;  %vm597_vm8 = vcmp.ge.f32.partialorder %v587_v7, 0.0  ;;  %v605_v12 = vmul.f32 0.2, %v587_v7 }
 0x356   :  { %vm596_vm9 = vcmp.ge.f32.partialorder %v582_v10, 0.0  ;;  %v604_v14 = vmul.f32 0.2, %v582_v10 }
 0x357   :  { %v613_v15 = vsel %vm597_vm8, %v587_v7, %v605_v12  ;;  %970 = vmatprep.mubr.msk.f32.mxu1 %vm44_vm0, %v618_v11 }
 0x358   :  { %v612_v16 = vsel %vm596_vm9, %v582_v10, %v604_v14  ;;  %971 = vmatmul.mubr.msk.f32.gmra.mrb[12].mxu1 %vm44_vm0, %v619_v13  ;;  %v621_v18 = vmul.f32 1.4142135, %v613_v15 }
 0x359   :  { %v620_v17 = vmul.f32 1.4142135, %v612_v16 }
 0x35b   :  { %973 = vmatprep.mubr.msk.f32.mxu1 %vm44_vm0, %v620_v17 }
 0x35c   :  { %974 = vmatmul.mubr.msk.f32.gmra.mrb[14].mxu1 %vm44_vm0, %v621_v18 }
 0x423   :  { %v966_v20 = vpop.f32.mrb[8].mxu1 }
 0x424   :  { %v731_v21 = vadd.f32 %v966_v20, %v839_v19  ;;  %v725_v22 = vpop.f32.mrb[9].mxu1 }
 0x425   :  { %v726_v23 = vadd.f32 %v839_v19, %v725_v22 }
 0x426   :  { %vm765_vm10 = vcmp.ge.f32.partialorder %v731_v21, 0.0  ;;  %v773_v24 = vmul.f32 0.2, %v731_v21 }
 0x427   :  { %vm764_vm11 = vcmp.ge.f32.partialorder %v726_v23, 0.0  ;;  %v772_v25 = vmul.f32 0.2, %v726_v23  ;;  %v969_v26 = vpop.f32.mrb[10].mxu1 }
 0x428   :  { %v781_v27 = vsel %vm765_vm10, %v731_v21, %v773_v24  ;;  %v741_v28 = vadd.f32 %v969_v26, %v839_v19  ;;  %v735_v29 = vpop.f32.mrb[11].mxu1 }
 0x429   :  { %v789_v30 = vmul.f32 1.4142135, %v781_v27  ;;  %v780_v31 = vsel %vm764_vm11, %v726_v23, %v772_v25  ;;  %v736_v32 = vadd.f32 %v839_v19, %v735_v29 }
 0x42a   :  { %v788_v33 = vmul.f32 1.4142135, %v780_v31  ;;  %vm767_vm12 = vcmp.ge.f32.partialorder %v741_v28, 0.0  ;;  %v775_v34 = vmul.f32 0.2, %v741_v28 }
 0x42b   :  { %797 = vst.msk [vmem:[%s1237_s3 + $0x8] sm:$0xff] %vm44_vm0, %v789_v30  ;;  %vm766_vm13 = vcmp.ge.f32.partialorder %v736_v32, 0.0  ;;  %v774_v35 = vmul.f32 0.2, %v736_v32  ;;  %v972_v36 = vpop.f32.mrb[12].mxu1 }
 0x42c   :  { %796 = vst.msk [vmem:[%s1237_s3] sm:$0xff] %vm44_vm0, %v788_v33  ;;  %v783_v37 = vsel %vm767_vm12, %v741_v28, %v775_v34  ;;  %v751_v38 = vadd.f32 %v972_v36, %v839_v19  ;;  %v745_v39 = vpop.f32.mrb[13].mxu1 }
 0x42d   :  { %v791_v40 = vmul.f32 1.4142135, %v783_v37  ;;  %v782_v41 = vsel %vm766_vm13, %v736_v32, %v774_v35  ;;  %v746_v42 = vadd.f32 %v839_v19, %v745_v39 }
 0x42e   :  { %v790_v43 = vmul.f32 1.4142135, %v782_v41  ;;  %vm769_vm14 = vcmp.ge.f32.partialorder %v751_v38, 0.0  ;;  %v777_v44 = vmul.f32 0.2, %v751_v38 }
 0x42f   :  { %799 = vst.msk [vmem:[%s1237_s3 + $0x18] sm:$0xff] %vm44_vm0, %v791_v40  ;;  %vm768_vm15 = vcmp.ge.f32.partialorder %v746_v42, 0.0  ;;  %v776_v45 = vmul.f32 0.2, %v746_v42  ;;  %v975_v46 = vpop.f32.mrb[14].mxu1 }
 0x430   :  { %798 = vst.msk [vmem:[%s1237_s3 + $0x10] sm:$0xff] %vm44_vm0, %v790_v43  ;;  %v785_v47 = vsel %vm769_vm14, %v751_v38, %v777_v44  ;;  %v761_v48 = vadd.f32 %v975_v46, %v839_v19  ;;  %v755_v49 = vpop.f32.mrb[15].mxu1 }
 0x431   :  { %v793_v50 = vmul.f32 1.4142135, %v785_v47  ;;  %v784_v51 = vsel %vm768_vm15, %v746_v42, %v776_v45  ;;  %v756_v52 = vadd.f32 %v839_v19, %v755_v49 }
 0x432   :  { %v792_v53 = vmul.f32 1.4142135, %v784_v51  ;;  %vm771_vm1 = vcmp.ge.f32.partialorder %v761_v48, 0.0  ;;  %v779_v54 = vmul.f32 0.2, %v761_v48 }
 0x433   :  { %801 = vst.msk [vmem:[%s1237_s3 + $0x28] sm:$0xff] %vm44_vm0, %v793_v50  ;;  %vm770_vm2 = vcmp.ge.f32.partialorder %v756_v52, 0.0  ;;  %v778_v55 = vmul.f32 0.2, %v756_v52 }
 0x434   :  { %800 = vst.msk [vmem:[%s1237_s3 + $0x20] sm:$0xff] %vm44_vm0, %v792_v53  ;;  %v787_v56 = vsel %vm771_vm1, %v761_v48, %v779_v54 }
 0x435   :  { %v795_v57 = vmul.f32 1.4142135, %v787_v56  ;;  %v786_v58 = vsel %vm770_vm2, %v756_v52, %v778_v55 }
 0x436   :  { %v794_v59 = vmul.f32 1.4142135, %v786_v58 }
 0x437   :  { %803 = vst.msk [vmem:[%s1237_s3 + $0x38] sm:$0xff] %vm44_vm0, %v795_v57 }
 0x438   :  { %802 = vst.msk [vmem:[%s1237_s3 + $0x30] sm:$0xff] %vm44_vm0, %v794_v59 }
 0x439   :  { %808 = vsyncpa [#allocation3], 1 }

</bundles_post_ra>
